<compile_context>
chip_gen: v7x
topology: tpu7x:2x2x1
jax: 0.10.0
libtpu: 0.0.40
codegen_flags: <defaults>
</compile_context>

<pallas_src>
import math

import jax
import jax.numpy as jnp
from jax.experimental import pallas as pl
from jax.experimental.pallas import tpu as pltpu


# ------------------------------ avg-pool path ------------------------------

def _pool_kernel(x_ref, p_ref, o_ref):
    # One MXU matmul performs the whole 2x2 average (and the lane/sublane
    # deinterleave) for this row block.
    o_ref[...] = jnp.dot(x_ref[...], p_ref[...],
                         preferred_element_type=jnp.float32).astype(o_ref.dtype)


def downsample_avgpool(x, *, vmem_budget=12 * 1024 * 1024):
    """avg_pool2d(x, kernel_size=2, stride=2) as one matmul per row block."""
    B, C, H, W = x.shape
    # TODO(synk): odd H/W (PyTorch floors the output) would need masked tails.
    assert H % 2 == 0 and W % 2 == 0
    Ho, Wo = H // 2, W // 2
    R = B * C * Ho                                  # total output rows

    # Lane-dense packing: k output rows per block row so the output last dim
    # is a multiple of 128 (dense vst instead of masked partial stores).
    if Wo >= 128:
        k = 1
    else:
        k_ideal = 128 // math.gcd(Wo, 128)          # smallest k with k*Wo % 128 == 0
        k = k_ideal if R % k_ideal == 0 else math.gcd(R, k_ideal)
    Rp = R // k
    lane_in, lane_out = k * 2 * W, k * Wo

    # Free, layout-preserving view: packed row g holds the 2*k input rows that
    # produce output rows [g*k, (g+1)*k).
    xs = x.reshape(Rp, lane_in)

    # Block-diagonal pooling matrix (4 entries of 0.25 per output column):
    #   out[:, j*Wo + wo] = 0.25 * sum_{off in {0,1,W,W+1}} xs[:, j*2W + 2*wo + off]
    # Operands stay f32 for PyTorch parity (bf16 would halve DMA bytes in this
    # HBM-bound kernel; gate that on the tolerance you need).
    j = jnp.arange(k)[:, None, None]
    wo = jnp.arange(Wo)[None, :, None]
    off = jnp.array([0, 1, W, W + 1])[None, None, :]
    rows = (j * 2 * W + 2 * wo + off).reshape(-1)
    cols = jnp.broadcast_to(j * Wo + wo, (k, Wo, 4)).reshape(-1)
    p = jnp.zeros((lane_in, lane_out), x.dtype).at[rows, cols].set(0.25)

    # Budget-driven row-block size (double-buffered in/out + pool matrix).
    def footprint(tr):
        return 2 * tr * lane_in * 4 + 2 * tr * lane_out * 4 + 2 * lane_in * lane_out * 4

    if Rp <= 8:
        tr = Rp
    else:
        tr = 8
        for cand in (1024, 512, 256, 128, 64, 32, 16):
            if cand <= Rp and footprint(cand) <= vmem_budget:
                tr = cand
                break

    n_blocks = -(-Rp // tr)             # cdiv + padded tail (no tr=R fallback)
    Rp_pad = n_blocks * tr
    if Rp_pad != Rp:
        xs = jnp.pad(xs, ((0, Rp_pad - Rp), (0, 0)))

    vmem_limit = int(min(48 << 20, max(16 << 20, footprint(tr) + (4 << 20))))
    out = pl.pallas_call(
        _pool_kernel,
        out_shape=jax.ShapeDtypeStruct((Rp_pad, lane_out), x.dtype),
        grid=(n_blocks,),
        in_specs=[pl.BlockSpec((tr, lane_in), lambda i: (i, 0)),
                  pl.BlockSpec((lane_in, lane_out), lambda i: (0, 0))],
        out_specs=pl.BlockSpec((tr, lane_out), lambda i: (i, 0)),
        compiler_params=pltpu.CompilerParams(
            dimension_semantics=("parallel",),
            vmem_limit_bytes=vmem_limit),
    )(xs, p)
    if Rp_pad != Rp:
        out = out[:Rp]
    return out.reshape(B, C, Ho, Wo)


# -------------------------------- conv path --------------------------------

def _conv_kernel(p0_ref, p1_ref, p2_ref, w_ref, b_ref, o_ref):
    # Accumulate straight into the f32 output block, initialized with the bias
    # (no separate whole-band accumulator + epilogue add pass).
    o_ref[0] = b_ref[...] + jnp.dot(p0_ref[0], w_ref[0],
                                    preferred_element_type=jnp.float32)
    o_ref[0] += jnp.dot(p1_ref[0], w_ref[1], preferred_element_type=jnp.float32)
    o_ref[0] += jnp.dot(p2_ref[0], w_ref[2], preferred_element_type=jnp.float32)


def _pick_conv_band(Ho, Wo, footprint, budget):
    # Divisor bands keep every plane/output block a plain Blocked slice; the
    # (band*Wo) % 8 check keeps the second-minor block dim sublane-aligned.
    divs = [d for d in range(1, Ho + 1)
            if Ho % d == 0 and ((d * Wo) % 8 == 0 or d == Ho)]
    fitting = [d for d in divs if footprint(d) <= budget]
    if not fitting:
        return min(divs)
    multi = [d for d in fitting if Ho // d >= 2]    # >B grid steps (megacore/pipeline)
    return max(multi) if multi else max(fitting)


def downsample_conv(x, weight, bias, *, vmem_budget=24 * 1024 * 1024):
    """Conv2d(C, C, kernel_size=3, stride=2, padding=0) after F.pad(x, (0,1,0,1))."""
    B, C, H, W = x.shape
    Cout, Cin, KH, KW = weight.shape
    assert (Cin, KH, KW) == (C, 3, 3), "expected Conv2d(C, C, kernel_size=3) weights"
    # TODO(synk): odd H/W needs PyTorch's floor semantics + tail masking.
    assert H % 2 == 0 and W % 2 == 0
    Ho, Wo = H // 2, W // 2
    M = Ho * Wo

    # ---- wrapper glue: pad, go NHWC, build three per-kh tap planes ----------
    # plane_kh[b, ho*Wo+wo, kw*C+c] = xpad[b, 2*ho+kh, 2*wo+kw, c].  Packing the
    # kw taps along channels makes K = 3C per matmul and keeps every row band a
    # plain, halo-free Blocked slice.
    # TODO(synk): this stores ~2.25x input bytes in HBM; an even/odd-row split
    # would be 1.5x but needs a manual halo DMA (pl.ANY + make_async_copy).
    xp = jnp.pad(x, ((0, 0), (0, 0), (0, 1), (0, 1)))           # F.pad(x, (0,1,0,1))
    xp = jnp.transpose(xp, (0, 2, 3, 1)).astype(jnp.bfloat16)   # NHWC [B, H+1, W+1, C]

    def tap_plane(kh):
        r = xp[:, kh:kh + 2 * Ho:2]                             # [B, Ho, W+1, C]
        taps = [r[:, :, kw:kw + 2 * Wo:2, :] for kw in range(3)]
        return jnp.concatenate(taps, axis=-1).reshape(B, M, 3 * C)

    planes = [tap_plane(kh) for kh in range(3)]

    # PyTorch weight [Cout, Cin, 3, 3] -> [kh, kw*C + cin, Cout] (bf16 operands,
    # f32 accumulation on the MXU).
    w3 = jnp.transpose(weight, (2, 3, 1, 0)).reshape(3, 3 * C, Cout).astype(jnp.bfloat16)
    b_row = bias.reshape(1, Cout).astype(jnp.float32)

    # ---- output-row band tiling (fixed VMEM budget, >B parallel steps) ------
    def footprint(band):
        rows = band * Wo
        return (3 * 2 * rows * 3 * C * 2        # three bf16 planes, double-buffered
                + 2 * rows * Cout * 4           # f32 output block, double-buffered
                + 2 * 9 * C * Cout * 2          # packed weights
                + 2 * Cout * 4)                 # bias

    band = _pick_conv_band(Ho, Wo, footprint, vmem_budget)
    n_bands = Ho // band
    rows = band * Wo

    plane_spec = pl.BlockSpec((1, rows, 3 * C), lambda b, g: (b, g, 0))
    # Derived from the actual tile footprint; well under v7x's 64 MiB physical.
    vmem_limit = int(min(48 << 20, max(16 << 20, footprint(band) + (8 << 20))))

    out = pl.pallas_call(
        _conv_kernel,
        out_shape=jax.ShapeDtypeStruct((B, M, Cout), jnp.float32),
        grid=(B, n_bands),
        in_specs=[plane_spec, plane_spec, plane_spec,
                  pl.BlockSpec((3, 3 * C, Cout), lambda b, g: (0, 0, 0)),
                  pl.BlockSpec((1, Cout), lambda b, g: (0, 0))],
        out_specs=pl.BlockSpec((1, rows, Cout), lambda b, g: (b, g, 0)),
        compiler_params=pltpu.CompilerParams(
            dimension_semantics=("parallel", "parallel"),
            vmem_limit_bytes=vmem_limit),
    )(*planes, w3, b_row)

    # [B, Ho*Wo, Cout] -> NCHW
    return jnp.transpose(out.reshape(B, Ho, Wo, Cout), (0, 3, 1, 2))


# ------------------------------- dispatcher --------------------------------

def downsample(x, with_conv, weight=None, bias=None):
    if with_conv:
        return downsample_conv(x, weight, bias)
    return downsample_avgpool(x)


# ----------------------------------- main -----------------------------------

if __name__ == "__main__":
    key = jax.random.PRNGKey(0)
    kx, kwt, kb = jax.random.split(key, 3)

    B, C, H, W = 2, 4, 16, 16
    x = jax.random.normal(kx, (B, C, H, W), dtype=jnp.float32)

    # Deterministic Conv2d(C, C, 3, stride=2) parameters (PyTorch-style bounds).
    fan_in = C * 3 * 3
    bound = 1.0 / (fan_in ** 0.5)
    weight = jax.random.uniform(kwt, (C, C, 3, 3), jnp.float32, -bound, bound)
    bias = jax.random.uniform(kb, (C,), jnp.float32, -bound, bound)

    # --- with_conv = True ---
    y_conv = jax.block_until_ready(downsample(x, True, weight, bias))
    xp = jnp.pad(x, ((0, 0), (0, 0), (0, 1), (0, 1)))
    y_conv_ref = jax.lax.conv_general_dilated(
        xp, weight, window_strides=(2, 2), padding="VALID",
        dimension_numbers=("NCHW", "OIHW", "NCHW"),
    ) + bias.reshape(1, C, 1, 1)
    assert y_conv.shape == (B, C, H // 2, W // 2)
    cerr = float(jnp.max(jnp.abs(y_conv - y_conv_ref)))
    # bf16 operands (f32 accumulation) -> loosened tolerance vs the f32 reference.
    assert jnp.allclose(y_conv, y_conv_ref, atol=2e-2, rtol=2e-2), cerr

    # --- with_conv = False ---
    y_pool = jax.block_until_ready(downsample(x, False))
    y_pool_ref = x.reshape(B, C, H // 2, 2, W // 2, 2).mean(axis=(3, 5))
    assert y_pool.shape == (B, C, H // 2, W // 2)
    perr = float(jnp.max(jnp.abs(y_pool - y_pool_ref)))
    # Operands stay f32; tolerance covers the MXU's reduced-precision f32 mode.
    assert jnp.allclose(y_pool, y_pool_ref, atol=2e-2, rtol=2e-2), perr

    print("KERNEL_OK")
</pallas_src>

<mosaic_0001>
module attributes {stable_mosaic.version = 11 : i64} {
  func.func @_conv_kernel(%arg0: i32, %arg1: i32, %arg2: memref<1x32x12xbf16, #tpu.memory_space<vmem>>, %arg3: memref<1x32x12xbf16, #tpu.memory_space<vmem>>, %arg4: memref<1x32x12xbf16, #tpu.memory_space<vmem>>, %arg5: memref<3x12x4xbf16, #tpu.memory_space<vmem>>, %arg6: memref<1x4xf32, #tpu.memory_space<vmem>>, %arg7: memref<1x32x4xf32, #tpu.memory_space<vmem>>) attributes {dimension_semantics = [#tpu.dimension_semantics<parallel>, #tpu.dimension_semantics<parallel>], iteration_bounds = array<i64: 2, 2>, scalar_prefetch = 0 : i64, scratch_operands = 0 : i64, tpu.core_type = #tpu.core_type<tc>, window_params = [{transform_indices = @transform_0, window_bounds = array<i64: 1, 32, 12>}, {transform_indices = @transform_1, window_bounds = array<i64: 1, 32, 12>}, {transform_indices = @transform_2, window_bounds = array<i64: 1, 32, 12>}, {pipeline_mode = #tpu.pipeline_mode<synchronous>, transform_indices = @transform_3, window_bounds = array<i64: 3, 12, 4>}, {pipeline_mode = #tpu.pipeline_mode<synchronous>, transform_indices = @transform_4, window_bounds = array<i64: 1, 4>}, {transform_indices = @transform_5, window_bounds = array<i64: 1, 32, 4>}]} {
    %c0 = arith.constant 0 : index
    %c0_0 = arith.constant 0 : index
    %0 = vector.load %arg6[%c0, %c0_0] : memref<1x4xf32, #tpu.memory_space<vmem>>, vector<1x4xf32>
    %c0_1 = arith.constant 0 : index
    %c0_2 = arith.constant 0 : index
    %c0_3 = arith.constant 0 : index
    %1 = vector.load %arg2[%c0_1, %c0_2, %c0_3] : memref<1x32x12xbf16, #tpu.memory_space<vmem>>, vector<1x32x12xbf16>
    %2 = vector.shape_cast %1 : vector<1x32x12xbf16> to vector<32x12xbf16>
    %c0_4 = arith.constant 0 : index
    %c0_5 = arith.constant 0 : index
    %c0_6 = arith.constant 0 : index
    %3 = vector.load %arg5[%c0_4, %c0_5, %c0_6] : memref<3x12x4xbf16, #tpu.memory_space<vmem>>, vector<1x12x4xbf16>
    %4 = vector.shape_cast %3 : vector<1x12x4xbf16> to vector<12x4xbf16>
    %cst = arith.constant dense<0.000000e+00> : vector<32x4xf32>
    %5 = tpu.matmul %2, %4, %cst {dimension_numbers = #tpu.dot_dimension_numbers<[1], [0], [0], [1], [0, 0, 1, 1], [], []>} : vector<32x12xbf16>, vector<12x4xbf16>, vector<32x4xf32> -> vector<32x4xf32>
    %6 = vector.broadcast %0 : vector<1x4xf32> to vector<32x4xf32>
    %7 = arith.addf %6, %5 : vector<32x4xf32>
    %c0_7 = arith.constant 0 : index
    %c0_8 = arith.constant 0 : index
    %c0_9 = arith.constant 0 : index
    %8 = vector.load %arg7[%c0_7, %c0_8, %c0_9] : memref<1x32x4xf32, #tpu.memory_space<vmem>>, vector<1x32x4xf32>
    %9 = vector.shape_cast %8 : vector<1x32x4xf32> to vector<32x4xf32>
    %10 = vector.shape_cast %7 : vector<32x4xf32> to vector<1x32x4xf32>
    tpu.vector_store %arg7[%c0_7, %c0_8, %c0_9], %10 {strides = array<i32>} : memref<1x32x4xf32, #tpu.memory_space<vmem>>, vector<1x32x4xf32>,
    %c0_10 = arith.constant 0 : index
    %c0_11 = arith.constant 0 : index
    %c0_12 = arith.constant 0 : index
    %11 = vector.load %arg7[%c0_10, %c0_11, %c0_12] : memref<1x32x4xf32, #tpu.memory_space<vmem>>, vector<1x32x4xf32>
    %12 = vector.shape_cast %11 : vector<1x32x4xf32> to vector<32x4xf32>
    %c0_13 = arith.constant 0 : index
    %c0_14 = arith.constant 0 : index
    %c0_15 = arith.constant 0 : index
    %13 = vector.load %arg3[%c0_13, %c0_14, %c0_15] : memref<1x32x12xbf16, #tpu.memory_space<vmem>>, vector<1x32x12xbf16>
    %14 = vector.shape_cast %13 : vector<1x32x12xbf16> to vector<32x12xbf16>
    %c1 = arith.constant 1 : index
    %c0_16 = arith.constant 0 : index
    %c0_17 = arith.constant 0 : index
    %15 = vector.load %arg5[%c1, %c0_16, %c0_17] : memref<3x12x4xbf16, #tpu.memory_space<vmem>>, vector<1x12x4xbf16>
    %16 = vector.shape_cast %15 : vector<1x12x4xbf16> to vector<12x4xbf16>
    %cst_18 = arith.constant dense<0.000000e+00> : vector<32x4xf32>
    %17 = tpu.matmul %14, %16, %cst_18 {dimension_numbers = #tpu.dot_dimension_numbers<[1], [0], [0], [1], [0, 0, 1, 1], [], []>} : vector<32x12xbf16>, vector<12x4xbf16>, vector<32x4xf32> -> vector<32x4xf32>
    %18 = arith.addf %12, %17 : vector<32x4xf32>
    %c0_19 = arith.constant 0 : index
    %c0_20 = arith.constant 0 : index
    %c0_21 = arith.constant 0 : index
    %19 = vector.load %arg7[%c0_19, %c0_20, %c0_21] : memref<1x32x4xf32, #tpu.memory_space<vmem>>, vector<1x32x4xf32>
    %20 = vector.shape_cast %19 : vector<1x32x4xf32> to vector<32x4xf32>
    %21 = vector.shape_cast %18 : vector<32x4xf32> to vector<1x32x4xf32>
    tpu.vector_store %arg7[%c0_19, %c0_20, %c0_21], %21 {strides = array<i32>} : memref<1x32x4xf32, #tpu.memory_space<vmem>>, vector<1x32x4xf32>,
    %c0_22 = arith.constant 0 : index
    %c0_23 = arith.constant 0 : index
    %c0_24 = arith.constant 0 : index
    %22 = vector.load %arg7[%c0_22, %c0_23, %c0_24] : memref<1x32x4xf32, #tpu.memory_space<vmem>>, vector<1x32x4xf32>
    %23 = vector.shape_cast %22 : vector<1x32x4xf32> to vector<32x4xf32>
    %c0_25 = arith.constant 0 : index
    %c0_26 = arith.constant 0 : index
    %c0_27 = arith.constant 0 : index
    %24 = vector.load %arg4[%c0_25, %c0_26, %c0_27] : memref<1x32x12xbf16, #tpu.memory_space<vmem>>, vector<1x32x12xbf16>
    %25 = vector.shape_cast %24 : vector<1x32x12xbf16> to vector<32x12xbf16>
    %c2 = arith.constant 2 : index
    %c0_28 = arith.constant 0 : index
    %c0_29 = arith.constant 0 : index
    %26 = vector.load %arg5[%c2, %c0_28, %c0_29] : memref<3x12x4xbf16, #tpu.memory_space<vmem>>, vector<1x12x4xbf16>
    %27 = vector.shape_cast %26 : vector<1x12x4xbf16> to vector<12x4xbf16>
    %cst_30 = arith.constant dense<0.000000e+00> : vector<32x4xf32>
    %28 = tpu.matmul %25, %27, %cst_30 {dimension_numbers = #tpu.dot_dimension_numbers<[1], [0], [0], [1], [0, 0, 1, 1], [], []>} : vector<32x12xbf16>, vector<12x4xbf16>, vector<32x4xf32> -> vector<32x4xf32>
    %29 = arith.addf %23, %28 : vector<32x4xf32>
    %c0_31 = arith.constant 0 : index
    %c0_32 = arith.constant 0 : index
    %c0_33 = arith.constant 0 : index
    %30 = vector.load %arg7[%c0_31, %c0_32, %c0_33] : memref<1x32x4xf32, #tpu.memory_space<vmem>>, vector<1x32x4xf32>
    %31 = vector.shape_cast %30 : vector<1x32x4xf32> to vector<32x4xf32>
    %32 = vector.shape_cast %29 : vector<32x4xf32> to vector<1x32x4xf32>
    tpu.vector_store %arg7[%c0_31, %c0_32, %c0_33], %32 {strides = array<i32>} : memref<1x32x4xf32, #tpu.memory_space<vmem>>, vector<1x32x4xf32>,
    return
  }
  func.func @transform_0(%arg0: i32, %arg1: i32) -> (i32, i32, i32) {
    %c0_i32 = arith.constant 0 : i32
    %c0_i32_0 = arith.constant 0 : i32
    return %arg0, %arg1, %c0_i32 : i32, i32, i32
  }
  func.func @transform_1(%arg0: i32, %arg1: i32) -> (i32, i32, i32) {
    %c0_i32 = arith.constant 0 : i32
    %c0_i32_0 = arith.constant 0 : i32
    return %arg0, %arg1, %c0_i32 : i32, i32, i32
  }
  func.func @transform_2(%arg0: i32, %arg1: i32) -> (i32, i32, i32) {
    %c0_i32 = arith.constant 0 : i32
    %c0_i32_0 = arith.constant 0 : i32
    return %arg0, %arg1, %c0_i32 : i32, i32, i32
  }
  func.func @transform_3(%arg0: i32, %arg1: i32) -> (i32, i32, i32) {
    %c0_i32 = arith.constant 0 : i32
    %c0_i32_0 = arith.constant 0 : i32
    %c0_i32_1 = arith.constant 0 : i32
    %c0_i32_2 = arith.constant 0 : i32
    return %c0_i32, %c0_i32_0, %c0_i32_1 : i32, i32, i32
  }
  func.func @transform_4(%arg0: i32, %arg1: i32) -> (i32, i32) {
    %c0_i32 = arith.constant 0 : i32
    %c0_i32_0 = arith.constant 0 : i32
    %c0_i32_1 = arith.constant 0 : i32
    return %c0_i32, %c0_i32_0 : i32, i32
  }
  func.func @transform_5(%arg0: i32, %arg1: i32) -> (i32, i32, i32) {
    %c0_i32 = arith.constant 0 : i32
    %c0_i32_0 = arith.constant 0 : i32
    return %arg0, %arg1, %c0_i32 : i32, i32, i32
  }
}

</mosaic_0001>

<bundles_post_ra>
// kernel: tpu_custom_call.1
= control target key start
LH: loop header
LB: loop body
LE: loop exit
PB: predicated region body
PF: predicated region fallthrough
CT: control target
= control target key end

     0   :  { %s932_s18 = smov 0   ;;  %s934_s19 = smov 0   ;;  %s1047_s0 = inlined_call_operand.vmem [shape: bf16[2,64,12], index: 0, kind: input, shape index: {}]   ;;  %s1048_s1 = inlined_call_operand.vmem [shape: bf16[2,64,12], index: 1, kind: input, shape index: {}]   ;;  %s1049_s2 = inlined_call_operand.vmem [shape: bf16[2,64,12], index: 2, kind: input, shape index: {}]   ;;  %s1050_s3 = inlined_call_operand.vmem [shape: bf16[3,12,4], index: 3, kind: input, shape index: {}]   ;;  %s1051_s4 = inlined_call_operand.vmem [shape: f32[1,4], index: 4, kind: input, shape index: {}]   ;;  %s1052_s5 = inlined_call_operand.vmem [shape: f32[2,64,4], index: 5, kind: output, shape index: {}]  }
   0x1   :  { %s936_s20 = smov 0   ;;  %s938_s21 = smov 0  }
   0x2   :  { %s940_s22 = smov 0  }
   0x3 LB: > { %s24_s23 = sadd.s32 1, %s892_s20  ;;  %s27_s24 = sadd.s32 1, %s896_s21  ;;  %s900_s22 = sphi %s940_s22, %s15_s22   ;;  %s896_s21 = sphi %s938_s21, %s1056_s21   ;;  %s892_s20 = sphi %s936_s20, %s1055_s20   ;;  %s888_s19 = sphi %s934_s19, %s1054_s19   ;;  %s884_s18 = sphi %s932_s18, %s1053_s18  }
   0x4   : > { %p25_p0 = scmp.ge.s32.totalorder %s24_s23, 2  ;;  %p748_p1 = scmp.ge.s32.totalorder %s900_s22, 1 }
   0x5   : > { %p242_p2 = scmp.lt.s32.totalorder %s900_s22, 5 }
   0x6   : > { %s1058_s23 = smov (%p25_p0, %s24_s23), 0  ;;  %s1060_s24 = smov (!%p25_p0, %s27_s24), %s896_s21 }
   0x7   : > { %p243_p3 = pnand %p748_p1, %p242_p2  ;;  %p29_p4 = scmp.ge.s32.totalorder %s1060_s24, 2 }
   0x8   : > { %v853_v0 = vld [vmem:[%s1050_s3] sm:$0x3f] (!%p243_p3)   ;;  %vm366_vm0 = vcmask (!%p243_p3), 1045504   ;;  %s749_s27 = sshll.u32 (!%p243_p3), %s884_s18, 2  ;;  %p297_p5 = scmp.lt.s32.totalorder (!%p243_p3), %s888_s19, 1  ;;  %vm359_vm1 = vcmask (!%p243_p3), 97280  }
   0x9   : > { %s1062_s24 = smov (%p29_p4, %s1060_s24), 0  ;;  %246 = sbr.rel (%p243_p3) target bundleno = 261 (0x105), region = 40 }
   0xa   : > { %810 = vmatprep.subr.msk.bf16.mxu0 (!%p243_p3), %vm366_vm0, %v853_v0  ;;  %v368_v1 = vsel (!%p243_p3), %vm366_vm0, %v853_v0, 0  ;;  %p299_p6 = scmp.lt.s32.totalorder (!%p243_p3), %s749_s27, 7  ;;  %v856_v2 = vld [vmem:[%s1050_s3 + $0x8] sm:$0x3f] (!%p243_p3)   ;;  %v859_v4 = vld [vmem:[%s1050_s3 + $0x10] sm:$0x3f] (!%p243_p3)  }
   0xb   : > { %793 = vmatpush3.bf16.msra.mxu0 (!%p243_p3), %v368_v1  ;;  %811 = vmatprep.subr.msk.bf16.mxu1 (!%p243_p3), %vm366_vm0, %v856_v2  ;;  %v467_v3 = vsel (!%p243_p3), %vm366_vm0, %v856_v2, 0  ;;  %v559_v7 = vsel (!%p243_p3), %vm366_vm0, %v859_v4, 0  ;;  %v766_v12 = vld [vmem:[%s1051_s4] ss:$0 sm:$0xff] (!%p243_p3)  ;;  %vm429_vm2 = vcmask (!%p243_p3), 31744  }
   0xc   : > { %799 = vmatpush3.bf16.msra.mxu1 (!%p243_p3), %v467_v3  ;;  %812 = vmatprep.subr.msk.bf16.mxu0 (!%p243_p3), %vm366_vm0, %v859_v4 }
  0x10   : > { %s1064_s19 = smov (!%p297_p5, %s888_s19), 1  ;;  %s1066_s27 = smov (!%p299_p6, %s749_s27), 7 }
  0x11   : > { %s750_s7 = sshll.u32 %s1064_s19, 3 }
  0x12   : > { %s302_s8 = sadd.s32 %s750_s7, %s1066_s27 }
  0x13   : > { %s751_s9 = sshll.u32 %s302_s8, 2  ;;  %s760_s19 = sshll.u32 %s302_s8, 3 }
  0x14   : > { %s304_s12 = scalar_lea.vmem %s1047_s0, %s751_s9  ;;  %s314_s15 = scalar_lea.vmem %s1048_s1, %s751_s9 }
  0x15   : > { %v854_v5 = vld [vmem:[%s304_s12] sm:$0xff]   ;;  %s324_s18 = scalar_lea.vmem %s1049_s2, %s751_s9  ;;  %v855_v6 = vld [vmem:[%s304_s12 + $0x8] sm:$0xff]   ;;  %s998_s29 = scalar_lea.vmem %s1052_s5, %s760_s19 }
  0x16   : > { %794 = vmatprep.mubr.msk.bf16.mxu0 %vm359_vm1, %v854_v5  ;;  %v857_v8 = vld [vmem:[%s314_s15] sm:$0xff]   ;;  %v858_v9 = vld [vmem:[%s314_s15 + $0x8] sm:$0xff]  }
  0x17   : > { %795 = vmatmul.mubr.msk.bf16.vlgmr.msra.gmra.mrb[0].mxu0 %vm359_vm1, %v855_v6  ;;  %800 = vmatprep.mubr.msk.bf16.mxu1 %vm359_vm1, %v857_v8  ;;  %v860_v10 = vld [vmem:[%s324_s18] sm:$0xff]   ;;  %v861_v11 = vld [vmem:[%s324_s18 + $0x8] sm:$0xff]  }
  0x18   : > { %805 = vmatpush3.bf16.msra.mxu0 %v559_v7  ;;  %801 = vmatmul.mubr.msk.bf16.vlgmr.msra.gmra.mrb[0].mxu1 %vm359_vm1, %v858_v9 }
  0x19   : > { %806 = vmatprep.mubr.msk.bf16.mxu0 %vm359_vm1, %v860_v10 }
  0x1f   : > { %807 = vmatmul.mubr.msk.bf16.vlgmr.msra.gmra.mrb[4].mxu0 %vm359_vm1, %v861_v11 }
  0xea   : > { %v796_v13 = vpop.f32.mrb[0].mxu0 }
  0xeb   : > { %v427_v14 = vadd.f32 %v796_v13, %v766_v12  ;;  %v404_v15 = vpop.f32.mrb[1].mxu0  ;;  %v802_v18 = vpop.f32.mrb[0].mxu1 }
  0xec   : > { %v425_v16 = vadd.f32 %v766_v12, %v404_v15  ;;  %v797_v17 = vpop.f32.mrb[2].mxu0  ;;  %v503_v21 = vpop.f32.mrb[1].mxu1 }
  0xed   : > { %432 = vst.msk [vmem:[%s998_s29 + $0x10] sm:$0xff] %vm429_vm2, %v427_v14  ;;  %v428_v19 = vadd.f32 %v797_v17, %v766_v12  ;;  %v407_v20 = vpop.f32.mrb[3].mxu0  ;;  %v803_v23 = vpop.f32.mrb[2].mxu1 }
  0xee   : > { %430 = vst.msk [vmem:[%s998_s29] sm:$0xff] %vm429_vm2, %v425_v16  ;;  %v426_v22 = vadd.f32 %v766_v12, %v407_v20  ;;  %v506_v24 = vpop.f32.mrb[3].mxu1 }
  0xef   : > { %433 = vst.msk [vmem:[%s998_s29 + $0x18] sm:$0xff] %vm429_vm2, %v428_v19 }
  0xf0   : > { %431 = vst.msk [vmem:[%s998_s29 + $0x8] sm:$0xff] %vm429_vm2, %v426_v22 }
  0xf2   : > { %v808_v25 = vpop.f32.mrb[4].mxu0 }
  0xf3   : > { %v595_v26 = vpop.f32.mrb[5].mxu0 }
  0xf4   : > { %v436_v27 = vld [vmem:[%s998_s29 + $0x10] sm:$0xff]  ;;  %v809_v28 = vpop.f32.mrb[6].mxu0 }
  0xf5   : > { %v520_v29 = vadd.f32 %v802_v18, %v436_v27  ;;  %v434_v30 = vld [vmem:[%s998_s29] sm:$0xff]  ;;  %v598_v31 = vpop.f32.mrb[7].mxu0 }
  0xf6   : > { %v518_v32 = vadd.f32 %v503_v21, %v434_v30  ;;  %v437_v33 = vld [vmem:[%s998_s29 + $0x18] sm:$0xff] }
  0xf7   : > { %524 = vst.msk [vmem:[%s998_s29 + $0x10] sm:$0xff] %vm429_vm2, %v520_v29  ;;  %v521_v34 = vadd.f32 %v803_v23, %v437_v33  ;;  %v435_v35 = vld [vmem:[%s998_s29 + $0x8] sm:$0xff] }
  0xf8   : > { %522 = vst.msk [vmem:[%s998_s29] sm:$0xff] %vm429_vm2, %v518_v32  ;;  %v519_v36 = vadd.f32 %v506_v24, %v435_v35 }
  0xf9   : > { %525 = vst.msk [vmem:[%s998_s29 + $0x18] sm:$0xff] %vm429_vm2, %v521_v34 }
  0xfa   : > { %523 = vst.msk [vmem:[%s998_s29 + $0x8] sm:$0xff] %vm429_vm2, %v519_v36 }
  0xfe   : > { %v528_v37 = vld [vmem:[%s998_s29 + $0x10] sm:$0xff] }
  0xff   : > { %v612_v38 = vadd.f32 %v808_v25, %v528_v37  ;;  %v526_v39 = vld [vmem:[%s998_s29] sm:$0xff] }
 0x100   : > { %v610_v40 = vadd.f32 %v595_v26, %v526_v39  ;;  %v529_v41 = vld [vmem:[%s998_s29 + $0x18] sm:$0xff] }
 0x101   : > { %616 = vst.msk [vmem:[%s998_s29 + $0x10] sm:$0xff] %vm429_vm2, %v612_v38  ;;  %v613_v42 = vadd.f32 %v809_v28, %v529_v41  ;;  %v527_v43 = vld [vmem:[%s998_s29 + $0x8] sm:$0xff] }
 0x102   : > { %614 = vst.msk [vmem:[%s998_s29] sm:$0xff] %vm429_vm2, %v610_v40  ;;  %v611_v44 = vadd.f32 %v598_v31, %v527_v43 }
 0x103   : > { %617 = vst.msk [vmem:[%s998_s29 + $0x18] sm:$0xff] %vm429_vm2, %v613_v42 }
 0x104   : > { %615 = vst.msk [vmem:[%s998_s29 + $0x8] sm:$0xff] %vm429_vm2, %v611_v44 }
 0x105 PF: > { %s15_s22 = sadd.s32 1, %s900_s22   ;;  %s1053_s18 = smov %s892_s20 }
 0x106   : > { %p12_p7 = scmp.ge.s32.totalorder %s15_s22, 6   ;;  %s1054_s19 = smov %s896_s21 }
 0x107   : > { %s1055_s20 = smov %s1058_s23  ;;  %s1056_s21 = smov %s1062_s24 }
 0x108   :  { %14 = sbr.rel (!%p12_p7) target bundleno = 3 (0x3), region = 78 }

</bundles_post_ra>
